<compile_context>
chip_gen: v5e
topology: v5e:2x2
jax: 0.10.0
libtpu: 0.0.40
codegen_flags: <defaults>
</compile_context>

<pallas_src>
import functools
import math

import jax
import jax.numpy as jnp
from jax.experimental import pallas as pl
from jax.experimental.pallas import tpu as pltpu


_CHUNK_ROWS = 32  # inner compute chunk (sublane multiple; matches int8/bf16/f32 tiling)


def _round_up(x, m):
    return ((x + m - 1) // m) * m


def _dice_partials_kernel(pred_ref, true_ref, out_ref, *,
                          n_valid, tile_rows, lane, needs_mask):
    """Grid = (B, num_k).  pred/true block: (1, tile_rows, lane) native dtype.

    out block: (1, 16, lane) f32 accumulator, revisited across the k axis —
    rows 0:8 hold intersection partials, rows 8:16 hold union partials.
    """
    k = pl.program_id(1)

    @pl.when(k == 0)
    def _():
        out_ref[...] = jnp.zeros_like(out_ref)

    def process(r0, crows):
        # `crows` is static; `r0` may be a traced chunk offset.
        x = pred_ref[0, pl.ds(r0, crows), :].astype(jnp.float32)
        t = true_ref[0, pl.ds(r0, crows), :].astype(jnp.float32)
        # Exact sigmoid with a single EUP transcendental (vs exp + reciprocal).
        p = 0.5 * jnp.tanh(0.5 * x) + 0.5
        inter = p * t
        union = p + t
        if needs_mask:
            # Mask the ragged / overhanging tail by flat element index
            # (n_valid < 2**31 for any realistic image, so int32 is fine).
            r_iota = jax.lax.broadcasted_iota(jnp.int32, (crows, lane), 0)
            l_iota = jax.lax.broadcasted_iota(jnp.int32, (crows, lane), 1)
            gidx = (k * tile_rows + r0 + r_iota) * lane + l_iota
            valid = gidx < n_valid
            inter = jnp.where(valid, inter, 0.0)
            union = jnp.where(valid, union, 0.0)
        # Fold (crows, lane) -> (8, lane) with whole-vreg-slab adds (VPU only,
        # no XLU cross-lane reduce, no SMEM scalar RMW).
        inter8 = inter.reshape(crows // 8, 8, lane).sum(axis=0)
        union8 = union.reshape(crows // 8, 8, lane).sum(axis=0)
        out_ref[0, 0:8, :] = out_ref[0, 0:8, :] + inter8
        out_ref[0, 8:16, :] = out_ref[0, 8:16, :] + union8

    n_full = tile_rows // _CHUNK_ROWS
    rem = tile_rows % _CHUNK_ROWS          # multiple of 8 by construction

    if n_full > 0:
        def body(c, carry):
            process(pl.multiple_of(c * _CHUNK_ROWS, _CHUNK_ROWS), _CHUNK_ROWS)
            return carry
        jax.lax.fori_loop(0, n_full, body, 0)
    if rem > 0:
        process(n_full * _CHUNK_ROWS, rem)


def dice_loss(y_pred, y_true, epsilon=1e-6):
    """Dice loss over a batch. y_pred, y_true: (B, 1, H, W) any float/int dtype.

    Returns a scalar float32 (mean over batch), matching the PyTorch module.
    """
    if isinstance(y_pred, tuple):
        y_pred = y_pred[0]
    assert y_pred.shape == y_true.shape, (y_pred.shape, y_true.shape)

    B = y_pred.shape[0]
    n = math.prod(y_pred.shape[1:])
    W = y_pred.shape[-1]

    # ---- Layout: pick a lane width that makes (B, rows, lane) a zero-copy
    # view of the input whenever possible (no HBM relayout / pad traffic). ----
    if W % 128 == 0:
        lane = W                                   # (B,C,H,W)->(B,C*H,W) is free
    else:
        lane = 128
        for cand in (512, 256, 128):
            if n % (8 * cand) == 0:                # exact division -> no pad
                lane = cand
                break
    rows = -(-n // lane)
    rows_total = _round_up(rows, 8)
    n_slab = rows_total * lane

    # ---- Tile sizing by BYTES (constant DMA length across dtypes). ----
    combined_isz = y_pred.dtype.itemsize + y_true.dtype.itemsize
    target_step_bytes = 8 * 1024 * 1024            # both inputs, one buffer
    rows_budget = max(_CHUNK_ROWS,
                      (target_step_bytes // (lane * combined_isz))
                      // _CHUNK_ROWS * _CHUNK_ROWS)
    tile_rows = min(rows_budget, rows_total)       # multiple of 8 always
    num_k = -(-rows_total // tile_rows)
    needs_mask = (num_k * tile_rows * lane != n)

    def _prep(x):
        flat = x.reshape(B, n)                     # native dtype, no f32 up-cast
        if n_slab > n:
            # Tail pad (< 8*lane elements). Zeros are safe for any dtype
            # because the kernel masks by the true element count.
            pad = jnp.zeros((B, n_slab - n), dtype=x.dtype)
            flat = jnp.concatenate([flat, pad], axis=1)
        return flat.reshape(B, rows_total, lane)

    pred3d = _prep(y_pred)
    true3d = _prep(y_true)

    n_proc = num_k * tile_rows * lane
    cost = pl.CostEstimate(
        flops=int(8 * B * n_proc),
        transcendentals=int(B * n_proc),
        bytes_accessed=int(B * n_proc * combined_isz + B * 16 * lane * 4),
    )

    kernel = functools.partial(
        _dice_partials_kernel,
        n_valid=int(n), tile_rows=int(tile_rows), lane=int(lane),
        needs_mask=bool(needs_mask))

    partials = pl.pallas_call(
        kernel,
        out_shape=jax.ShapeDtypeStruct((B, 16, lane), jnp.float32),
        grid_spec=pltpu.PrefetchScalarGridSpec(
            num_scalar_prefetch=0,
            grid=(B, num_k),
            in_specs=[
                pl.BlockSpec((1, tile_rows, lane), lambda b, k: (b, k, 0)),
                pl.BlockSpec((1, tile_rows, lane), lambda b, k: (b, k, 0)),
            ],
            out_specs=pl.BlockSpec((1, 16, lane), lambda b, k: (b, 0, 0)),
        ),
        compiler_params=pltpu.CompilerParams(
            dimension_semantics=("parallel", "arbitrary"),
            vmem_limit_bytes=32 * 1024 * 1024),
        cost_estimate=cost,
    )(pred3d, true3d)

    # Tiny final reduce + dice math on (B, 16, lane) — negligible XLA work.
    inter = jnp.sum(partials[:, 0:8, :], axis=(1, 2))     # (B,)
    union = jnp.sum(partials[:, 8:16, :], axis=(1, 2))    # (B,)
    dice = (2.0 * inter + epsilon) / (union + epsilon)
    # TODO(synk): for B == 1 on v7x, split the k range across the two
    # TensorCores with an extra leading "parallel" grid axis so neither idles.
    return jnp.mean(1.0 - dice)


def _dice_loss_ref(y_pred, y_true, epsilon=1e-6):
    """Pure-JAX reference mirroring the PyTorch forward."""
    p = jax.nn.sigmoid(y_pred.astype(jnp.float32))
    t = y_true.astype(jnp.float32)
    inter = jnp.sum(p * t, axis=(1, 2, 3))
    union = jnp.sum(p, axis=(1, 2, 3)) + jnp.sum(t, axis=(1, 2, 3))
    dice = (2.0 * inter + epsilon) / (union + epsilon)
    return jnp.mean(1.0 - dice)


if __name__ == "__main__":
    key = jax.random.PRNGKey(0)
    k1, k2 = jax.random.split(key)

    B, C, H, W = 2, 1, 16, 16
    y_pred = jax.random.normal(k1, (B, C, H, W), dtype=jnp.float32)           # logits
    y_true = (jax.random.uniform(k2, (B, C, H, W)) > 0.5).astype(jnp.float32)

    # f32 inputs, non-lane-aligned W -> exercises the in-kernel tail mask.
    loss = jax.block_until_ready(dice_loss(y_pred, y_true))
    ref = jax.block_until_ready(_dice_loss_ref(y_pred, y_true))
    assert jnp.allclose(loss, ref, atol=1e-5, rtol=1e-5), (loss, ref)

    # Native narrow dtypes (bf16 logits + int8 mask) streamed straight through,
    # cast to f32 per chunk inside the kernel.
    y_pred_bf16 = y_pred.astype(jnp.bfloat16)
    y_true_i8 = y_true.astype(jnp.int8)
    loss2 = jax.block_until_ready(dice_loss(y_pred_bf16, y_true_i8))
    ref2 = jax.block_until_ready(
        _dice_loss_ref(y_pred_bf16.astype(jnp.float32), y_true_i8.astype(jnp.float32)))
    assert jnp.allclose(loss2, ref2, atol=1e-5, rtol=1e-5), (loss2, ref2)

    # Lane-aligned width -> zero-copy layout fast path, mask-free kernel.
    yp = jax.random.normal(k1, (2, 1, 8, 128), dtype=jnp.float32)
    yt = (jax.random.uniform(k2, (2, 1, 8, 128)) > 0.5).astype(jnp.float32)
    loss3 = jax.block_until_ready(dice_loss(yp, yt))
    ref3 = jax.block_until_ready(_dice_loss_ref(yp, yt))
    assert jnp.allclose(loss3, ref3, atol=1e-5, rtol=1e-5), (loss3, ref3)

    print("KERNEL_OK")
</pallas_src>

<mosaic_0001>
module attributes {stable_mosaic.version = 11 : i64} {
  func.func @_dice_partials_kernel(%arg0: i32, %arg1: i32, %arg2: memref<1x8x128xf32, #tpu.memory_space<vmem>>, %arg3: memref<1x8x128xf32, #tpu.memory_space<vmem>>, %arg4: memref<1x16x128xf32, #tpu.memory_space<vmem>>) attributes {dimension_semantics = [#tpu.dimension_semantics<parallel>, #tpu.dimension_semantics<arbitrary>], iteration_bounds = array<i64: 2, 1>, scalar_prefetch = 0 : i64, scratch_operands = 0 : i64, tpu.core_type = #tpu.core_type<tc>, window_params = [{transform_indices = @transform_0, window_bounds = array<i64: 1, 8, 128>}, {transform_indices = @transform_1, window_bounds = array<i64: 1, 8, 128>}, {transform_indices = @transform_2, window_bounds = array<i64: 1, 16, 128>}]} {
    %c0_i32 = arith.constant 0 : i32
    %0 = arith.cmpi eq, %arg1, %c0_i32 : i32
    %1 = arith.extui %0 : i1 to i32
    %c0_i32_0 = arith.constant 0 : i32
    %2 = arith.cmpi ne, %1, %c0_i32_0 : i32
    scf.if %2 {
      %cst_24 = arith.constant 0.000000e+00 : f32
      %47 = vector.broadcast %cst_24 : f32 to vector<1x16x128xf32>
      %c0_25 = arith.constant 0 : index
      %c0_26 = arith.constant 0 : index
      %c0_27 = arith.constant 0 : index
      %48 = vector.load %arg4[%c0_25, %c0_26, %c0_27] : memref<1x16x128xf32, #tpu.memory_space<vmem>>, vector<1x16x128xf32>
      tpu.vector_store %arg4[%c0_25, %c0_26, %c0_27], %47 {strides = array<i32>} : memref<1x16x128xf32, #tpu.memory_space<vmem>>, vector<1x16x128xf32>,
    } else {
    }
    %c0 = arith.constant 0 : index
    %c0_1 = arith.constant 0 : index
    %c0_2 = arith.constant 0 : index
    %3 = vector.load %arg2[%c0, %c0_1, %c0_2] : memref<1x8x128xf32, #tpu.memory_space<vmem>>, vector<1x8x128xf32>
    %4 = vector.shape_cast %3 : vector<1x8x128xf32> to vector<8x128xf32>
    %c0_3 = arith.constant 0 : index
    %c0_4 = arith.constant 0 : index
    %c0_5 = arith.constant 0 : index
    %5 = vector.load %arg3[%c0_3, %c0_4, %c0_5] : memref<1x8x128xf32, #tpu.memory_space<vmem>>, vector<1x8x128xf32>
    %6 = vector.shape_cast %5 : vector<1x8x128xf32> to vector<8x128xf32>
    %cst = arith.constant 5.000000e-01 : f32
    %7 = vector.broadcast %cst : f32 to vector<8x128xf32>
    %8 = arith.mulf %7, %4 : vector<8x128xf32>
    %9 = math.tanh %8 : vector<8x128xf32>
    %cst_6 = arith.constant 5.000000e-01 : f32
    %10 = vector.broadcast %cst_6 : f32 to vector<8x128xf32>
    %11 = arith.mulf %10, %9 : vector<8x128xf32>
    %cst_7 = arith.constant 5.000000e-01 : f32
    %12 = vector.broadcast %cst_7 : f32 to vector<8x128xf32>
    %13 = arith.addf %11, %12 : vector<8x128xf32>
    %14 = arith.mulf %13, %6 : vector<8x128xf32>
    %15 = arith.addf %13, %6 : vector<8x128xf32>
    %16 = tpu.iota {dimensions = array<i32: 0>} : vector<8x128xi32>
    %17 = tpu.iota {dimensions = array<i32: 1>} : vector<8x128xi32>
    %c8_i32 = arith.constant 8 : i32
    %18 = arith.muli %arg1, %c8_i32 : i32
    %c0_i32_8 = arith.constant 0 : i32
    %19 = arith.addi %18, %c0_i32_8 : i32
    %20 = vector.broadcast %19 : i32 to vector<8x128xi32>
    %21 = arith.addi %20, %16 : vector<8x128xi32>
    %c128_i32 = arith.constant 128 : i32
    %22 = vector.broadcast %c128_i32 : i32 to vector<8x128xi32>
    %23 = arith.muli %21, %22 : vector<8x128xi32>
    %24 = arith.addi %23, %17 : vector<8x128xi32>
    %c256_i32 = arith.constant 256 : i32
    %25 = vector.broadcast %c256_i32 : i32 to vector<8x128xi32>
    %26 = arith.cmpi slt, %24, %25 : vector<8x128xi32>
    %cst_9 = arith.constant 0.000000e+00 : f32
    %27 = vector.broadcast %cst_9 : f32 to vector<8x128xf32>
    %28 = arith.select %26, %14, %27 : vector<8x128xi1>, vector<8x128xf32>
    %cst_10 = arith.constant 0.000000e+00 : f32
    %29 = vector.broadcast %cst_10 : f32 to vector<8x128xf32>
    %30 = arith.select %26, %15, %29 : vector<8x128xi1>, vector<8x128xf32>
    %31 = vector.shape_cast %28 : vector<8x128xf32> to vector<1x8x128xf32>
    %cst_11 = arith.constant dense<0.000000e+00> : vector<8x128xf32>
    %32 = vector.multi_reduction <add>, %31, %cst_11 [0] : vector<1x8x128xf32> to vector<8x128xf32>
    %33 = vector.shape_cast %30 : vector<8x128xf32> to vector<1x8x128xf32>
    %cst_12 = arith.constant dense<0.000000e+00> : vector<8x128xf32>
    %34 = vector.multi_reduction <add>, %33, %cst_12 [0] : vector<1x8x128xf32> to vector<8x128xf32>
    %c0_13 = arith.constant 0 : index
    %c0_14 = arith.constant 0 : index
    %c0_15 = arith.constant 0 : index
    %35 = vector.load %arg4[%c0_13, %c0_14, %c0_15] : memref<1x16x128xf32, #tpu.memory_space<vmem>>, vector<1x8x128xf32>
    %36 = vector.shape_cast %35 : vector<1x8x128xf32> to vector<8x128xf32>
    %37 = arith.addf %36, %32 : vector<8x128xf32>
    %c0_16 = arith.constant 0 : index
    %c0_17 = arith.constant 0 : index
    %c0_18 = arith.constant 0 : index
    %38 = vector.load %arg4[%c0_16, %c0_17, %c0_18] : memref<1x16x128xf32, #tpu.memory_space<vmem>>, vector<1x8x128xf32>
    %39 = vector.shape_cast %38 : vector<1x8x128xf32> to vector<8x128xf32>
    %40 = vector.shape_cast %37 : vector<8x128xf32> to vector<1x8x128xf32>
    tpu.vector_store %arg4[%c0_16, %c0_17, %c0_18], %40 {strides = array<i32>} : memref<1x16x128xf32, #tpu.memory_space<vmem>>, vector<1x8x128xf32>,
    %c0_19 = arith.constant 0 : index
    %c8 = arith.constant 8 : index
    %c0_20 = arith.constant 0 : index
    %41 = vector.load %arg4[%c0_19, %c8, %c0_20] : memref<1x16x128xf32, #tpu.memory_space<vmem>>, vector<1x8x128xf32>
    %42 = vector.shape_cast %41 : vector<1x8x128xf32> to vector<8x128xf32>
    %43 = arith.addf %42, %34 : vector<8x128xf32>
    %c0_21 = arith.constant 0 : index
    %c8_22 = arith.constant 8 : index
    %c0_23 = arith.constant 0 : index
    %44 = vector.load %arg4[%c0_21, %c8_22, %c0_23] : memref<1x16x128xf32, #tpu.memory_space<vmem>>, vector<1x8x128xf32>
    %45 = vector.shape_cast %44 : vector<1x8x128xf32> to vector<8x128xf32>
    %46 = vector.shape_cast %43 : vector<8x128xf32> to vector<1x8x128xf32>
    tpu.vector_store %arg4[%c0_21, %c8_22, %c0_23], %46 {strides = array<i32>} : memref<1x16x128xf32, #tpu.memory_space<vmem>>, vector<1x8x128xf32>,
    return
  }
  func.func @transform_0(%arg0: i32, %arg1: i32) -> (i32, i32, i32) {
    %c0_i32 = arith.constant 0 : i32
    %c0_i32_0 = arith.constant 0 : i32
    return %arg0, %arg1, %c0_i32 : i32, i32, i32
  }
  func.func @transform_1(%arg0: i32, %arg1: i32) -> (i32, i32, i32) {
    %c0_i32 = arith.constant 0 : i32
    %c0_i32_0 = arith.constant 0 : i32
    return %arg0, %arg1, %c0_i32 : i32, i32, i32
  }
  func.func @transform_2(%arg0: i32, %arg1: i32) -> (i32, i32, i32) {
    %c0_i32 = arith.constant 0 : i32
    %c0_i32_0 = arith.constant 0 : i32
    %c0_i32_1 = arith.constant 0 : i32
    return %arg0, %c0_i32, %c0_i32_0 : i32, i32, i32
  }
}

</mosaic_0001>

<bundles_post_ra>
// kernel: tpu_custom_call.1
= control target key start
LH: loop header
LB: loop body
LE: loop exit
PB: predicated region body
PF: predicated region fallthrough
CT: control target
= control target key end

     0   :  { %7 = vsyncpa [#allocation3], 0  ;;  %s758_s0 = inlined_call_operand.hbm [shape: f32[2,8,128], index: 0, kind: input, shape index: {}]   ;;  %s759_s1 = inlined_call_operand.hbm [shape: f32[2,8,128], index: 1, kind: input, shape index: {}]   ;;  %s760_s2 = inlined_call_operand.hbm [shape: f32[2,16,128], index: 2, kind: output, shape index: {}]  }
   0x1   :  { %9 = vsyncpa [#allocation3 + $0x1], 0 }
   0x2   :  { %10 = vsyncpa [#allocation6], 0 }
   0x3   :  { %12 = vsyncpa [#allocation6 + $0x1], 0 }
   0x4   :  { %13 = vsyncpa [#allocation4], 0 }
   0x5   :  { %15 = vsyncpa [#allocation4 + $0x1], 0  ;;  %s629_s9 = smov 0   ;;  %s631_s10 = smov 0  }
   0x6   :  { %s633_s11 = smov 0   ;;  %s635_s12 = smov 0  }
   0x7   :  { %s637_s13 = smov 0   ;;  %s639_s14 = smov 0  }
   0x8 LB: > { %s374_s15 = sadd.s32 4294967295, %s610_s14   ;;  %s375_s16 = sadd.s32 4294967294, %s610_s14   ;;  %s610_s14 = sphi %s639_s14, %s21_s14   ;;  %s606_s13 = sphi %s637_s13, %s769_s13   ;;  %s602_s12 = sphi %s635_s12, %s768_s12   ;;  %s598_s11 = sphi %s633_s11, %s767_s11   ;;  %s594_s10 = sphi %s631_s10, %s766_s10   ;;  %s590_s9 = sphi %s629_s9, %s765_s9  }
   0x9   : > { %s33_s17 = sadd.s32 1, %s606_s13  ;;  %s42_s18 = sadd.s32 1, %s598_s11 }
   0xa   : > { %p35_p0 = scmp.ge.s32.totalorder %s33_s17, 2  ;;  %p49_p1 = scmp.ne.s32.totalorder %s598_s11, %s594_s10 }
   0xb   : > { %p50_p2 = scmp.eq.s32.totalorder %s610_s14, 0  ;;  %p55_p3 = scmp.ne.s32.totalorder %s594_s10, %s590_s9 }
   0xc   : > { %s771_s17 = smov (%p35_p0, %s33_s17), 0  ;;  %p56_p5 = scmp.eq.s32.totalorder %s374_s15, 0 }
   0xd   : > { %p670_p4 = por %p50_p2, %p49_p1  ;;  %s37_s20 = ssub.s32 %s606_s13, %s771_s17 }
   0xe   : > { %p107_p6 = scmp.eq.s32.totalorder %s374_s15, 1  ;;  %p40_p7 = scmp.eq.s32.totalorder %s37_s20, 0 }
   0xf   : > { %p676_p8 = por %p56_p5, %p55_p3  ;;  %p113_p10 = scmp.eq.s32.totalorder %s375_s16, 1 }
  0x10   : > { %p680_p9 = por %p107_p6, %p49_p1  ;;  %p377_p12 = scmp.ge.s32.totalorder %s610_s14, 2 }
  0x11   : > { %s685_s23 = scalar_select %p40_p7, %s598_s11, %s42_s18  }
  0x12   : > { %p687_p11 = por %p113_p10, %p55_p3  ;;  %p409_p13 = scmp.lt.s32.totalorder %s610_s14, 2 }
  0x13   : > { %s133_s25 = sand.u32 1, %s598_s11   ;;  %s379_s27 = sshll.u32 %s606_s13, 3 }
  0x14   : > { %s378_s26 = sshll.u32 %s133_s25, 3  ;;  %s142_s30 = scalar_lea.hbm %s758_s0, %s379_s27 }
  0x15   : > { %s137_s3 = scalar_lea.vmem [#allocation2], %s378_s26  ;;  %s144_s5 = sshll.u32 %s142_s30, 4  ;;  %s145_s5 = int_to_ptr.hbm [resolvable:$true] %s144_s5 }
  0x16   : > { %s146_s4 = sshll.u32 %s137_s3, 4  ;;  %p399_p0 = pnand %p409_p13, %p670_p4  ;;  %s147_s4 = int_to_ptr.vmem [resolvable:$true] %s146_s4 }
  0x17   : > { %p382_p1 = scmp.ge.s32.totalorder %s610_s14, 1  ;;  %p171_p2 = scmp.lt.s32.totalorder %s610_s14, 3 }
  0x18   : > { %s134_s6 = scalar_lea.sflag [#allocation3], %s133_s25  ;;  %s162_s15 = scalar_lea.hbm %s759_s1, %s379_s27 }
  0x19   : > { %401 = dma.hbm_to_vmem [thread:$0]  (!%p399_p0), %s145_s5, 128, %s147_s4, %s134_s6  }
  0x1a   : > { %p172_p3 = pnand %p382_p1, %p171_p2  ;;  %s157_s16 = scalar_lea.vmem [#allocation5], %s378_s26 }
  0x1b   : > { %s166_s18 = sshll.u32 %s157_s16, 4  ;;  %s164_s20 = sshll.u32 %s162_s15, 4  ;;  %s167_s18 = int_to_ptr.vmem [resolvable:$true] %s166_s18  ;;  %s165_s20 = int_to_ptr.hbm [resolvable:$true] %s164_s20 }
  0x1c   : > { %s154_s28 = scalar_lea.sflag [#allocation6], %s133_s25  ;;  %175 = sbr.rel (%p172_p3) target bundleno = 58 (0x3a), region = 28 }
  0x1d   : > { %404 = dma.hbm_to_vmem [thread:$0]  (!%p399_p0), %s165_s20, 128, %s167_s18, %s154_s28  }
  0x1e   : > { %s706_s19 = sand.u32 (!%p172_p3), 1, %s594_s10  }
  0x1f   : > { %s383_s29 = sshll.u32 (!%p172_p3), %s706_s19, 3  ;;  %s178_s30 = scalar_lea.sflag (!%p172_p3), [#allocation3], %s706_s19 }
  0x20   : > { %s181_s3 = scalar_lea.vmem (!%p172_p3), [#allocation2], %s383_s29 }
  0x21   : > { %577 = dma.done.wait (%p676_p8), %s178_s30, 128  }
  0x22   : > { %579 = vsyncadd (%p676_p8), %s178_s30, 4294967168  ;;  %s188_s26 = scalar_lea.sflag [#allocation6], %s706_s19  ;;  %s191_s25 = scalar_lea.vmem [#allocation5], %s383_s29 }
  0x23   : > { %581 = dma.done.wait (%p676_p8), %s188_s26, 128  }
  0x24   : > { %583 = vsyncadd (%p676_p8), %s188_s26, 4294967168  ;;  %v232_v0 = vlaneseq  ;;  %v224_v1 = vld [vmem:[%s181_s3] sm:$0xff]  ;;  %s385_s27 = sshll.u32 %s706_s19, 4  ;;  %s391_s4 = sshll.u32 %s602_s12, 4  ;;  %v225_v9 = vld [vmem:[%s191_s25] sm:$0xff] }
  0x25   : > { %v226_v2 = vmul.f32 0.5, %v224_v1  ;;  %s264_s21 = scalar_lea.hbm %s760_s2, %s391_s4  ;;  %s217_s7 = scalar_lea.vmem [#allocation7], %s385_s27 }
  0x26   : > { %v233_v3 = vshrl.u32 %v232_v0, 7  ;;  %v235_v4 = vand.u32 127, %v232_v0  ;;  %s265_s8 = sshll.u32 %s217_s7, 4  ;;  %s267_s15 = sshll.u32 %s264_s21, 4  ;;  %s266_s8 = int_to_ptr.vmem [resolvable:$true] %s265_s8  ;;  %s268_s15 = int_to_ptr.hbm [resolvable:$true] %s267_s15 }
  0x27   : > { %462 = vtanh.f32 %v226_v2  ;;  %s253_s12 = scalar_lea.sflag [#allocation4], %s706_s19  ;;  %s538_s16 = sshra.s32 %s268_s15, 4  ;;  %s539_s16 = int_to_ptr.hbm [resolvable:$true] %s538_s16 }
  0x28   : > { %v239_v5 = vmul.u32 128, %v233_v3  ;;  %s540_s18 = scalar_lea.hbm %s539_s16, 16  ;;  %s544_s29 = scalar_lea.hbm %s760_s2, 32 }
  0x29   : > { %p541_p4 = scmp.ne.s32.totalorder %s539_s16, %s540_s18  ;;  %p545_p7 = scmp.lt.s32.totalorder %s539_s16, %s760_s2 }
  0x2a   : > { %v240_v7 = vadd.s32 %v239_v5, %v235_v4  ;;  %p546_p8 = scmp.lt.s32.totalorder %s544_s29, %s540_s18 }
  0x2b   : > { %p542_p5 = pnand %p541_p4, %p680_p9 }
  0x2c   : > { %vm241_vm0 = vcmp.lt.s32.totalorder %v240_v7, 256  ;;  %p547_p10 = por %p546_p8, %p545_p7 }
  0x2d   : > { %v463_v6 = vpop.eup %462  ;;  %p543_p6 = pneg %p542_p5 }
  0x2e   : > { %v228_v8 = vmul.f32 0.5, %v463_v6 }
  0x2f   : > { %p548_p13 = pnand %p547_p10, %p543_p6 }
  0x30   : > { %v229_v10 = vadd.f32 0.5, %v228_v8 }
  0x32   : > { %v230_v11 = vmul.f32 %v229_v10, %v225_v9  ;;  %v231_v12 = vadd.f32 %v229_v10, %v225_v9 }
  0x34   : > { %v242_v13 = vsel %vm241_vm0, %v230_v11, 0.0  ;;  %v243_v14 = vsel %vm241_vm0, %v231_v12, 0.0 }
  0x35   : > { %248 = vst [vmem:[%s217_s7] sm:$0xff] %v242_v13 }
  0x36   : > { %251 = vst [vmem:[%s217_s7 + $0x8] sm:$0xff] %v243_v14 }
  0x37   : > { %551 = shalt.err (!%p548_p13)
}
  0x38   : > { %s612_s19 = smov 128   ;;  %s613_s26 = smov 8  }
  0x39   : > { %396 = dma.vmem_to_hbm [thread:$0]  (%p680_p9), %s266_s8, 256, %s268_s15, %s253_s12, %s612_s19, %s612_s19, %s613_s26  }
  0x3a PF: > { %s282_s25 = sand.u32 1, %s590_s9   ;;  %p406_p0 = pnand %p377_p12, %p687_p11 }
  0x3b   : > { %s283_s27 = scalar_lea.sflag [#allocation4], %s282_s25 }
  0x3c   : > { %p407_p1 = pneg %p406_p0 }
  0x3e   : > { %585 = dma.done.wait (%p407_p1), %s283_s27, 256  }
  0x3f   : > { %587 = vsyncadd (%p407_p1), %s283_s27, 4294967040  ;;  %s21_s14 = sadd.s32 1, %s610_s14   ;;  %s765_s9 = smov %s594_s10 }
  0x40   : > { %p18_p2 = scmp.ge.s32.totalorder %s21_s14, 4   ;;  %s766_s10 = smov %s598_s11 }
  0x41   : > { %s767_s11 = smov %s685_s23  ;;  %s768_s12 = smov %s606_s13 }
  0x42   : > { %s769_s13 = smov %s771_s17  ;;  %20 = sbr.rel (!%p18_p2) target bundleno = 8 (0x8), region = 90 }
  0x47   :  { %289 = vsyncpa [#allocation3], 1 }
  0x48   :  { %291 = vsyncpa [#allocation3 + $0x1], 1 }
  0x49   :  { %292 = vsyncpa [#allocation6], 1 }
  0x4a   :  { %294 = vsyncpa [#allocation6 + $0x1], 1 }
  0x4b   :  { %295 = vsyncpa [#allocation4], 1 }
  0x4c   :  { %297 = vsyncpa [#allocation4 + $0x1], 1 }

</bundles_post_ra>
